<compile_context>
chip_gen: v6e
topology: v6e:2x2x1
jax: 0.10.0
libtpu: 0.0.40
codegen_flags: <defaults>
</compile_context>

<pallas_src>
import jax
import jax.numpy as jnp
from jax.experimental import pallas as pl
from jax.experimental.pallas import tpu as pltpu


def _round_up(x, m):
    return ((x + m - 1) // m) * m


def _block_diag(a, b):
    ra, ca = a.shape
    rb, cb = b.shape
    top = jnp.concatenate([a, jnp.zeros((ra, cb), a.dtype)], axis=1)
    bot = jnp.concatenate([jnp.zeros((rb, ca), b.dtype), b], axis=1)
    return jnp.concatenate([top, bot], axis=0)


def q_critic_kernel(sa_ref, w1_ref, b1_ref, w2_ref, b2_ref,
                    w3r1_ref, w3r2_ref, b3_ref, out_ref):
    # Layer 1: single MXU matmul over the concatenated (state|action) tile.
    h = jnp.dot(sa_ref[...], w1_ref[...], preferred_element_type=jnp.float32)
    h = jnp.maximum(h + b1_ref[...], 0.0)
    # Layer 2: fused twin heads (block-diagonal W2), bf16 MXU inputs, f32 acc.
    h = jnp.dot(h.astype(w2_ref.dtype), w2_ref[...],
                preferred_element_type=jnp.float32)
    h = jnp.maximum(h + b2_ref[...], 0.0)
    # Layer 3 (N=2): VPU multiply + XLU lane reduction instead of an MXU pass.
    #   w3r1 = [w3a^T | 0], w3r2 = [0 | w3b^T]  -> exact per-head dot products.
    q1 = jnp.sum(h * w3r1_ref[...], axis=-1, keepdims=True)
    q2 = jnp.sum(h * w3r2_ref[...], axis=-1, keepdims=True)
    out = jnp.concatenate([q1, q2], axis=1) + b3_ref[...]
    out_ref[...] = out.astype(out_ref.dtype)


def init_q_critic_params(key, state_dim, action_dim, hid_shape):
    """Deterministic synthetic parameter init (shapes match the PyTorch module)."""
    layers = [state_dim + action_dim] + list(hid_shape) + [1]
    params = []
    for _q in range(2):  # Q_1 and Q_2
        for i in range(len(layers) - 1):
            key, kw, kb = jax.random.split(key, 3)
            fan_in, fan_out = layers[i], layers[i + 1]
            scale = 1.0 / jnp.sqrt(jnp.float32(fan_in))
            w = jax.random.uniform(kw, (fan_in, fan_out), jnp.float32, -scale, scale)
            b = jax.random.uniform(kb, (1, fan_out), jnp.float32, -scale, scale)
            params.append(w)
            params.append(b)
    return params  # [W1a,b1a,W2a,b2a,W3a,b3a, W1b,b1b,W2b,b2b,W3b,b3b]


def pack_q_critic_params(params, matmul_dtype=jnp.bfloat16):
    """One-time twin-head weight packing (hoisted out of the forward hot path)."""
    (w1a, b1a, w2a, b2a, w3a, b3a,
     w1b, b1b, w2b, b2b, w3b, b3b) = params
    h2 = w3a.shape[0]
    w1_f = jnp.concatenate([w1a, w1b], axis=1).astype(matmul_dtype)   # (S+A, 2*h1)
    b1_f = jnp.concatenate([b1a, b1b], axis=1).astype(jnp.float32)    # (1, 2*h1)
    w2_f = _block_diag(w2a, w2b).astype(matmul_dtype)                 # (2*h1, 2*h2)
    b2_f = jnp.concatenate([b2a, b2b], axis=1).astype(jnp.float32)    # (1, 2*h2)
    zeros = jnp.zeros((1, h2), jnp.float32)
    w3r1 = jnp.concatenate([w3a.T, zeros], axis=1).astype(jnp.float32)  # (1, 2*h2)
    w3r2 = jnp.concatenate([zeros, w3b.T], axis=1).astype(jnp.float32)  # (1, 2*h2)
    b3_f = jnp.concatenate([b3a, b3b], axis=1).astype(jnp.float32)      # (1, 2)
    return (w1_f, b1_f, w2_f, b2_f, w3r1, w3r2, b3_f)


def q_critic_forward(state, action, packed, *, block_b=2048):
    """Pallas implementation of Q_Critic.forward -> (q1, q2)."""
    w1_f, b1_f, w2_f, b2_f, w3r1, w3r2, b3_f = packed
    B = state.shape[0]

    # Single concatenated activation (matches torch.cat([state, action], 1));
    # its HBM cost is hidden under the MXU-bound kernel. bf16 halves DMA bytes.
    sa = jnp.concatenate([state, action], axis=1).astype(w1_f.dtype)  # (B, S+A)
    in_feat = sa.shape[1]

    # Batch tiling: 8-row aligned, capped at ceil(B/2) so the grid has >= 2
    # steps whenever possible (v7x megacore sharding of the parallel axis).
    tb = min(block_b, max(8, _round_up(pl.cdiv(B, 2), 8)))
    grid = (pl.cdiv(B, tb),)  # ragged tail handled by Pallas boundary masking

    def rowblock(feat):
        return pl.BlockSpec((tb, feat), lambda i: (i, 0))

    def resident(arr):
        # Full-array block whose index never changes -> stays VMEM-resident.
        return pl.BlockSpec(arr.shape, lambda i: (0, 0))

    out = pl.pallas_call(
        q_critic_kernel,
        out_shape=jax.ShapeDtypeStruct((B, 2), jnp.float32),
        grid=grid,
        in_specs=[
            rowblock(in_feat),
            resident(w1_f),
            resident(b1_f),
            resident(w2_f),
            resident(b2_f),
            resident(w3r1),
            resident(w3r2),
            resident(b3_f),
        ],
        out_specs=rowblock(2),
        compiler_params=pltpu.CompilerParams(
            dimension_semantics=("parallel",)),
    )(sa, w1_f, b1_f, w2_f, b2_f, w3r1, w3r2, b3_f)

    # TODO(synk): downstream code could consume the (B, 2) slab directly and
    # skip these two tiny slice ops.
    return out[:, 0:1], out[:, 1:2]


def q_critic_ref(state, action, params):
    """Pure-JAX float32 reference (unfused twin heads) for correctness checking."""
    def mlp3(sa, w1, b1, w2, b2, w3, b3):
        h = jnp.maximum(sa @ w1 + b1, 0.0)
        h = jnp.maximum(h @ w2 + b2, 0.0)
        return h @ w3 + b3

    sa = jnp.concatenate([state, action], axis=1)
    (w1a, b1a, w2a, b2a, w3a, b3a,
     w1b, b1b, w2b, b2b, w3b, b3b) = params
    q1 = mlp3(sa, w1a, b1a, w2a, b2a, w3a, b3a)
    q2 = mlp3(sa, w1b, b1b, w2b, b2b, w3b, b3b)
    return q1, q2


if __name__ == "__main__":
    # Small shapes consistent with the module.
    batch, state_dim, action_dim = 8, 24, 8
    hid_shape = (32, 32)

    key = jax.random.PRNGKey(0)
    k_state, k_action, k_params = jax.random.split(key, 3)

    state = jax.random.normal(k_state, (batch, state_dim), jnp.float32)
    action = jax.random.normal(k_action, (batch, action_dim), jnp.float32)
    params = init_q_critic_params(k_params, state_dim, action_dim, hid_shape)

    # One-time weight packing (outside the jitted hot path).
    packed = pack_q_critic_params(params)

    q1, q2 = jax.jit(q_critic_forward)(state, action, packed)
    jax.block_until_ready((q1, q2))

    q1_ref, q2_ref = q_critic_ref(state, action, params)
    assert q1.shape == (batch, 1) and q2.shape == (batch, 1)
    # bf16 matmul inputs (f32 accumulation) -> relaxed tolerance vs f32 ref.
    assert jnp.allclose(q1, q1_ref, atol=5e-2, rtol=5e-2)
    assert jnp.allclose(q2, q2_ref, atol=5e-2, rtol=5e-2)

    print("KERNEL_OK")
</pallas_src>

<mosaic_0001>
module attributes {stable_mosaic.version = 11 : i64} {
  func.func @q_critic_kernel(%arg0: i32, %arg1: memref<8x32xbf16, #tpu.memory_space<vmem>>, %arg2: memref<32x64xbf16, #tpu.memory_space<vmem>>, %arg3: memref<1x64xf32, #tpu.memory_space<vmem>>, %arg4: memref<64x64xbf16, #tpu.memory_space<vmem>>, %arg5: memref<1x64xf32, #tpu.memory_space<vmem>>, %arg6: memref<1x64xf32, #tpu.memory_space<vmem>>, %arg7: memref<1x64xf32, #tpu.memory_space<vmem>>, %arg8: memref<1x2xf32, #tpu.memory_space<vmem>>, %arg9: memref<8x2xf32, #tpu.memory_space<vmem>>) attributes {dimension_semantics = [#tpu.dimension_semantics<parallel>], iteration_bounds = array<i64: 1>, scalar_prefetch = 0 : i64, scratch_operands = 0 : i64, tpu.core_type = #tpu.core_type<tc>, window_params = [{transform_indices = @transform_0, window_bounds = array<i64: 8, 32>}, {pipeline_mode = #tpu.pipeline_mode<synchronous>, transform_indices = @transform_1, window_bounds = array<i64: 32, 64>}, {pipeline_mode = #tpu.pipeline_mode<synchronous>, transform_indices = @transform_2, window_bounds = array<i64: 1, 64>}, {pipeline_mode = #tpu.pipeline_mode<synchronous>, transform_indices = @transform_3, window_bounds = array<i64: 64, 64>}, {pipeline_mode = #tpu.pipeline_mode<synchronous>, transform_indices = @transform_4, window_bounds = array<i64: 1, 64>}, {pipeline_mode = #tpu.pipeline_mode<synchronous>, transform_indices = @transform_5, window_bounds = array<i64: 1, 64>}, {pipeline_mode = #tpu.pipeline_mode<synchronous>, transform_indices = @transform_6, window_bounds = array<i64: 1, 64>}, {pipeline_mode = #tpu.pipeline_mode<synchronous>, transform_indices = @transform_7, window_bounds = array<i64: 1, 2>}, {transform_indices = @transform_8, window_bounds = array<i64: 8, 2>}]} {
    %c0 = arith.constant 0 : index
    %c0_0 = arith.constant 0 : index
    %0 = vector.load %arg1[%c0, %c0_0] : memref<8x32xbf16, #tpu.memory_space<vmem>>, vector<8x32xbf16>
    %c0_1 = arith.constant 0 : index
    %c0_2 = arith.constant 0 : index
    %1 = vector.load %arg2[%c0_1, %c0_2] : memref<32x64xbf16, #tpu.memory_space<vmem>>, vector<32x64xbf16>
    %cst = arith.constant dense<0.000000e+00> : vector<8x64xf32>
    %2 = tpu.matmul %0, %1, %cst {dimension_numbers = #tpu.dot_dimension_numbers<[1], [0], [0], [1], [0, 0, 1, 1], [], []>} : vector<8x32xbf16>, vector<32x64xbf16>, vector<8x64xf32> -> vector<8x64xf32>
    %c0_3 = arith.constant 0 : index
    %c0_4 = arith.constant 0 : index
    %3 = vector.load %arg3[%c0_3, %c0_4] : memref<1x64xf32, #tpu.memory_space<vmem>>, vector<1x64xf32>
    %4 = vector.broadcast %3 : vector<1x64xf32> to vector<8x64xf32>
    %5 = arith.addf %2, %4 : vector<8x64xf32>
    %cst_5 = arith.constant 0.000000e+00 : f32
    %6 = vector.broadcast %cst_5 : f32 to vector<8x64xf32>
    %7 = arith.maximumf %5, %6 : vector<8x64xf32>
    %8 = arith.truncf %7 : vector<8x64xf32> to vector<8x64xbf16>
    %c0_6 = arith.constant 0 : index
    %c0_7 = arith.constant 0 : index
    %9 = vector.load %arg4[%c0_6, %c0_7] : memref<64x64xbf16, #tpu.memory_space<vmem>>, vector<64x64xbf16>
    %cst_8 = arith.constant dense<0.000000e+00> : vector<8x64xf32>
    %10 = tpu.matmul %8, %9, %cst_8 {dimension_numbers = #tpu.dot_dimension_numbers<[1], [0], [0], [1], [0, 0, 1, 1], [], []>} : vector<8x64xbf16>, vector<64x64xbf16>, vector<8x64xf32> -> vector<8x64xf32>
    %c0_9 = arith.constant 0 : index
    %c0_10 = arith.constant 0 : index
    %11 = vector.load %arg5[%c0_9, %c0_10] : memref<1x64xf32, #tpu.memory_space<vmem>>, vector<1x64xf32>
    %12 = vector.broadcast %11 : vector<1x64xf32> to vector<8x64xf32>
    %13 = arith.addf %10, %12 : vector<8x64xf32>
    %cst_11 = arith.constant 0.000000e+00 : f32
    %14 = vector.broadcast %cst_11 : f32 to vector<8x64xf32>
    %15 = arith.maximumf %13, %14 : vector<8x64xf32>
    %c0_12 = arith.constant 0 : index
    %c0_13 = arith.constant 0 : index
    %16 = vector.load %arg6[%c0_12, %c0_13] : memref<1x64xf32, #tpu.memory_space<vmem>>, vector<1x64xf32>
    %17 = vector.broadcast %16 : vector<1x64xf32> to vector<8x64xf32>
    %18 = arith.mulf %15, %17 : vector<8x64xf32>
    %cst_14 = arith.constant dense<0.000000e+00> : vector<8xf32>
    %19 = vector.multi_reduction <add>, %18, %cst_14 [1] : vector<8x64xf32> to vector<8xf32>
    %20 = vector.shape_cast %19 : vector<8xf32> to vector<8x1xf32>
    %c0_15 = arith.constant 0 : index
    %c0_16 = arith.constant 0 : index
    %21 = vector.load %arg7[%c0_15, %c0_16] : memref<1x64xf32, #tpu.memory_space<vmem>>, vector<1x64xf32>
    %22 = vector.broadcast %21 : vector<1x64xf32> to vector<8x64xf32>
    %23 = arith.mulf %15, %22 : vector<8x64xf32>
    %cst_17 = arith.constant dense<0.000000e+00> : vector<8xf32>
    %24 = vector.multi_reduction <add>, %23, %cst_17 [1] : vector<8x64xf32> to vector<8xf32>
    %25 = vector.shape_cast %24 : vector<8xf32> to vector<8x1xf32>
    %26 = tpu.concatenate %20, %25 in 1 : vector<8x1xf32>, vector<8x1xf32> -> vector<8x2xf32>
    %c0_18 = arith.constant 0 : index
    %c0_19 = arith.constant 0 : index
    %27 = vector.load %arg8[%c0_18, %c0_19] : memref<1x2xf32, #tpu.memory_space<vmem>>, vector<1x2xf32>
    %28 = vector.broadcast %27 : vector<1x2xf32> to vector<8x2xf32>
    %29 = arith.addf %26, %28 : vector<8x2xf32>
    %c0_20 = arith.constant 0 : index
    %c0_21 = arith.constant 0 : index
    %30 = vector.load %arg9[%c0_20, %c0_21] : memref<8x2xf32, #tpu.memory_space<vmem>>, vector<8x2xf32>
    tpu.vector_store %arg9[%c0_20, %c0_21], %29 {strides = array<i32>} : memref<8x2xf32, #tpu.memory_space<vmem>>, vector<8x2xf32>,
    return
  }
  func.func @transform_0(%arg0: i32) -> (i32, i32) {
    %c0_i32 = arith.constant 0 : i32
    %c0_i32_0 = arith.constant 0 : i32
    return %arg0, %c0_i32 : i32, i32
  }
  func.func @transform_1(%arg0: i32) -> (i32, i32) {
    %c0_i32 = arith.constant 0 : i32
    %c0_i32_0 = arith.constant 0 : i32
    %c0_i32_1 = arith.constant 0 : i32
    return %c0_i32, %c0_i32_0 : i32, i32
  }
  func.func @transform_2(%arg0: i32) -> (i32, i32) {
    %c0_i32 = arith.constant 0 : i32
    %c0_i32_0 = arith.constant 0 : i32
    %c0_i32_1 = arith.constant 0 : i32
    return %c0_i32, %c0_i32_0 : i32, i32
  }
  func.func @transform_3(%arg0: i32) -> (i32, i32) {
    %c0_i32 = arith.constant 0 : i32
    %c0_i32_0 = arith.constant 0 : i32
    %c0_i32_1 = arith.constant 0 : i32
    return %c0_i32, %c0_i32_0 : i32, i32
  }
  func.func @transform_4(%arg0: i32) -> (i32, i32) {
    %c0_i32 = arith.constant 0 : i32
    %c0_i32_0 = arith.constant 0 : i32
    %c0_i32_1 = arith.constant 0 : i32
    return %c0_i32, %c0_i32_0 : i32, i32
  }
  func.func @transform_5(%arg0: i32) -> (i32, i32) {
    %c0_i32 = arith.constant 0 : i32
    %c0_i32_0 = arith.constant 0 : i32
    %c0_i32_1 = arith.constant 0 : i32
    return %c0_i32, %c0_i32_0 : i32, i32
  }
  func.func @transform_6(%arg0: i32) -> (i32, i32) {
    %c0_i32 = arith.constant 0 : i32
    %c0_i32_0 = arith.constant 0 : i32
    %c0_i32_1 = arith.constant 0 : i32
    return %c0_i32, %c0_i32_0 : i32, i32
  }
  func.func @transform_7(%arg0: i32) -> (i32, i32) {
    %c0_i32 = arith.constant 0 : i32
    %c0_i32_0 = arith.constant 0 : i32
    %c0_i32_1 = arith.constant 0 : i32
    return %c0_i32, %c0_i32_0 : i32, i32
  }
  func.func @transform_8(%arg0: i32) -> (i32, i32) {
    %c0_i32 = arith.constant 0 : i32
    %c0_i32_0 = arith.constant 0 : i32
    return %arg0, %c0_i32 : i32, i32
  }
}

</mosaic_0001>

<bundles_post_ra>
// kernel: q_critic_forward.1
= control target key start
LH: loop header
LB: loop body
LE: loop exit
PB: predicated region body
PF: predicated region fallthrough
CT: control target
= control target key end

     0   :  { %13 = vsyncpa [#allocation3], 0  ;;  %s311_s27 = smov [#allocation2]   ;;  %s400_s0 = inlined_call_operand.vmem [shape: bf16[8,32], index: 0, kind: input, shape index: {}]   ;;  %s401_s1 = inlined_call_operand.hbm [shape: bf16[32,64], index: 1, kind: input, shape index: {}]   ;;  %s402_s2 = inlined_call_operand.vmem [shape: f32[1,64], index: 2, kind: input, shape index: {}]   ;;  %s403_s3 = inlined_call_operand.vmem [shape: bf16[64,64], index: 3, kind: input, shape index: {}]   ;;  %s404_s4 = inlined_call_operand.vmem [shape: f32[1,64], index: 4, kind: input, shape index: {}]   ;;  %s405_s5 = inlined_call_operand.vmem [shape: f32[1,64], index: 5, kind: input, shape index: {}]   ;;  %s406_s6 = inlined_call_operand.vmem [shape: f32[1,64], index: 6, kind: input, shape index: {}]   ;;  %s407_s7 = inlined_call_operand.vmem [shape: f32[1,2], index: 7, kind: input, shape index: {}]   ;;  %s408_s8 = inlined_call_operand.vmem [shape: f32[8,2], index: 8, kind: output, shape index: {}]  }
   0x1   :  { %s21_s28 = sshll.u32 %s311_s27, 4  ;;  %s22_s28 = int_to_ptr.vmem [resolvable:$true] %s21_s28 }
   0x2   :  { %s297_s29 = scalar_lea.vmem %s22_s28, 256  ;;  %p302_p1 = scmp.lt.s32.totalorder %s22_s28, %s22_s28 }
   0x3   :  { %p298_p0 = scmp.ne.s32.totalorder %s22_s28, %s297_s29  ;;  %p303_p2 = scmp.lt.s32.totalorder %s297_s29, %s297_s29 }
   0x5   :  { %p304_p3 = por %p303_p2, %p302_p1 }
   0x7   :  { %p305_p4 = pnand %p304_p3, %p298_p0 }
   0x9   :  { %308 = shalt.err (!%p305_p4)
}
   0xa   :  { %s312_s30 = smov 64   ;;  %s313_s9 = smov 4  }
   0xb   :  { %27 = dma.hbm_to_vmem [thread:$0]  %s401_s1, 256, %s22_s28, [#allocation3], %s312_s30, %s312_s30, %s313_s9  }
   0xc   :  { %309 = dma.done.wait [#allocation3], 256  }
   0xd   :  { %310 = vsyncadd [#allocation3], 4294967040  ;;  %v314_v0 = vmov 0.0   ;;  %vm315_vm0 = vmmov 0   ;;  %v283_v1 = vld [vmem:[#allocation2 + $0x8] sm:$0xff]   ;;  %v284_v2 = vld [vmem:[#allocation2] sm:$0xff]  }
   0xe   :  { %258 = vmatprep.subr.bf16.mxu0 %v314_v0  ;;  %262 = vmatprep.mubr.msk.bf16.mxu0 %vm315_vm0, %v314_v0  ;;  %v285_v3 = vld [vmem:[%s403_s3 + $0x18] sm:$0xff]   ;;  %v286_v4 = vld [vmem:[%s403_s3 + $0x10] sm:$0xff]   ;;  %v44_v5 = vld [vmem:[%s400_s0] sm:$0xf]  ;;  %vm68_vm1 = vcmask 261120   ;;  %vm153_vm2 = vcmask 523264  }
   0xf   :  { %266 = vmatprep.subr.bf16.mxu1 %v314_v0  ;;  %274 = vmatprep.mubr.msk.bf16.mxu1 %vm315_vm0, %v314_v0  ;;  %v287_v6 = vld [vmem:[%s403_s3 + $0x8] sm:$0xff]   ;;  %v288_v7 = vld [vmem:[%s403_s3] sm:$0xff]   ;;  %vm220_vm3 = vcmask 7168   ;;  %vm230_vm4 = vcmask 15360  }
  0x10   :  { %259 = vmatpush3.bf16.msra.mxu0 %v283_v1  ;;  %267 = vmatpush3.bf16.msra.mxu1 %v285_v3  ;;  %v237_v8 = vld [vmem:[%s402_s2] ss:$0 sm:$0xff] }
  0x11   :  { %260 = vmatprep.subr.bf16.mxu0 %v314_v0  ;;  %268 = vmatprep.subr.bf16.mxu1 %v314_v0  ;;  %v241_v16 = vld [vmem:[%s404_s4] ss:$0 sm:$0xff] }
  0x12   :  { %v247_v20 = vld [vmem:[%s405_s5] ss:$0 sm:$0xff] }
  0x13   :  { %v248_v23 = vld [vmem:[%s406_s6] ss:$0 sm:$0xff] }
  0x14   :  { %261 = vmatpush3.bf16.msra.mxu0 %v284_v2  ;;  %269 = vmatpush3.bf16.msra.mxu1 %v286_v4  ;;  %v249_v30 = vld [vmem:[%s407_s7] ss:$0 sm:$0xff] }
  0x15   :  { %270 = vmatprep.subr.bf16.mxu1 %v314_v0 }
  0x17   :  { %263 = vmatmul.mubr.msk.bf16.vlgmr.msra.gmra.mxu0 %vm68_vm1, %v44_v5 }
  0x18   :  { %271 = vmatpush3.bf16.msra.mxu1 %v287_v6 }
  0x19   :  { %272 = vmatprep.subr.bf16.mxu1 %v314_v0 }
  0x1c   :  { %273 = vmatpush3.bf16.msra.mxu1 %v288_v7 }
  0xd7   :  { %v106_v9 = vpop.f32.mrf.mxu0 }
  0xd8   :  { %v107_v10 = vadd.f32 %v237_v8, %v106_v9 }
  0xd9   :  { %v264_v11 = vpop.f32.mrf.mxu0 }
  0xda   :  { %v112_v12 = vmax.f32 %v107_v10, 0.0 }
  0xdb   :  { %v109_v13 = vpop.f32.mrf.mxu0 }
  0xdc   :  { %v113_v14 = vpack.c.bf16 %v112_v12, %v112_v12 }
  0xdd   :  { %v265_v15 = vpop.f32.mrf.mxu0 }
  0xde   :  { %275 = vmatmul.mubr.msk.bf16.vlgmr.msra.gmra.mxu1 %vm153_vm2, %v113_v14 }
 0x19e   :  { %v191_v17 = vpop.f32.mrf.mxu1 }
 0x19f   :  { %v192_v18 = vadd.f32 %v241_v16, %v191_v17 }
 0x1a0   :  { %v276_v19 = vpop.f32.mrf.mxu1 }
 0x1a1   :  { %v197_v21 = vmax.f32 %v192_v18, 0.0 }
 0x1a2   :  { %v194_v22 = vpop.f32.mrf.mxu1 }
 0x1a3   :  { %v205_v24 = vmul.f32 %v247_v20, %v197_v21  ;;  %v216_v27 = vmul.f32 %v248_v23, %v197_v21 }
 0x1a4   :  { %v277_v25 = vpop.f32.mrf.mxu1 }
 0x1a5   :  { %v206_v26 = vsel %vm153_vm2, %v205_v24, 0.0  ;;  %v217_v28 = vsel %vm153_vm2, %v216_v27, 0.0 }
 0x1a6   :  { %207 = vadd.xlane.f32.xlu0 %v206_v26 }
 0x1aa   :  { %218 = vadd.xlane.f32.xlu0 %v217_v28 }
 0x22f   :  { %v208_v29 = vpop.xlane.xlu0 %207 }
 0x233   :  { %v219_v31 = vpop.xlane.xlu0 %218 }
 0x234   :  { %v221_v32 = vsel %vm220_vm3, %v208_v29, %v219_v31 }
 0x235   :  { %v229_v33 = vadd.f32 %v249_v30, %v221_v32 }
 0x237   :  { %231 = vst.msk [vmem:[%s408_s8] sm:$0xff] %vm230_vm4, %v229_v33 }
 0x238   :  { %236 = vsyncpa [#allocation3], 1 }

</bundles_post_ra>
